<compile_context>
chip_gen: v7x
topology: tpu7x:2x2x1
jax: 0.10.0
libtpu: 0.0.40
codegen_flags: <defaults>
</compile_context>

<pallas_src>
import functools

import jax
import jax.numpy as jnp
from jax.experimental import pallas as pl
from jax.experimental.pallas import tpu as pltpu


def _round_up(x, m):
    return (x + m - 1) // m * m


# ----------------------------------------------------------------------------
# Fused Decoder kernel
# ----------------------------------------------------------------------------
def _decoder_kernel(b1_ref, x2b_ref, mrow_ref, mcol_ref,
                    w_up_ref, w1a_ref, w1b_ref, w2_ref,
                    p_up_ref, p1_ref, p2_ref,
                    o_ref, y_buf,
                    *, inv_count, lv, dil, k_up, k_dc, guard, left_dc, t_max,
                    eps):
    """Strip lane layout: example n occupies lanes [n*sp, (n+1)*sp).  Kernel
    inputs (b1, x2b) carry their stage's 'same' left padding baked into the
    strip; the inter-stage scratch keeps data at strip offset 0 behind a
    128-aligned zero guard band, so a conv tap k is a static-offset full-width
    slice at `base + k*dil` and each stash is a single lane-aligned store."""
    mask_row = mrow_ref[...]            # (1, lv)  f32: 1.0 on valid output lanes
    mask_col = mcol_ref[...]            # (lv, 8)  f32: mask replicated for MXU sums
    base_s = guard - left_dc            # tap base offset inside the scratch buffer

    # Zero the guard band and the tap-headroom tail once; the [guard, guard+lv)
    # body is fully overwritten by the masked stash below.
    if guard > 0:
        y_buf[:, 0:guard] = jnp.zeros((y_buf.shape[0], guard), y_buf.dtype)
    if t_max > 0:
        y_buf[:, guard + lv:guard + lv + t_max] = jnp.zeros(
            (y_buf.shape[0], t_max), y_buf.dtype)

    def conv(w_ref, buf_ref, base, k_size, acc=None):
        # K tap-shifted dots accumulated in f32 — no (C*K, Lv) im2col operand is
        # ever materialized, and the skip-concat folds into the same accumulator.
        for k in range(k_size):
            off = base + k * dil
            part = jnp.dot(w_ref[k], buf_ref[:, off:off + lv],
                           preferred_element_type=jnp.float32)
            acc = part if acc is None else acc + part
        return acc

    def epilogue(acc, p_ref):
        # acc: (C_p, lv) f32 conv result (no bias); p_ref rows = [bias;gamma;beta].
        cp = acc.shape[0]
        bias = p_ref[0:cp]                               # (C_p, 1)
        gamma = p_ref[cp:2 * cp]
        beta = p_ref[2 * cp:3 * cp]
        y = jnp.maximum(acc + bias, 0.0)                 # conv bias + ReLU (f32)
        # BatchNorm1d training-mode stats over the valid lanes; masked sums run
        # on the (otherwise idle) MXU: s = sum(y*mask), ss = sum(y^2*mask).
        s = jnp.dot(y, mask_col, preferred_element_type=jnp.float32)[:, 0:1]
        ss = jnp.dot(y * y, mask_col, preferred_element_type=jnp.float32)[:, 0:1]
        mean = s * inv_count
        var = jnp.maximum(ss * inv_count - mean * mean, 0.0)
        scale = jax.lax.rsqrt(var + eps) * gamma         # (C_p, 1)
        shift = beta - mean * scale                      # (C_p, 1)
        return y * scale + shift                         # 2 VPU ops per element

    def stash(y_norm):
        # Single lane-aligned full-width store; mask zeroes inter-example /
        # tail lanes in f32, then one bf16 pack.
        y_buf[:, guard:guard + lv] = (y_norm * mask_row).astype(y_buf.dtype)

    # Stage 1: SingleConv(in_ch, out_ch, kernel_size=scale_factor) on upsampled x1.
    y1 = epilogue(conv(w_up_ref, b1_ref, 0, k_up), p_up_ref)
    stash(y1)

    # Stage 2: DoubleConv's first SingleConv on concat([x2, y1], channel axis).
    # The concat is never materialized: both channel groups accumulate into the
    # same f32 accumulator (x2 branch reads the pre-padded input strips, the
    # upsampled branch reads the scratch with the guard-band tap base).
    acc2 = conv(w1a_ref, x2b_ref, 0, k_dc)
    acc2 = conv(w1b_ref, y_buf, base_s, k_dc, acc=acc2)
    y2 = epilogue(acc2, p1_ref)
    stash(y2)                                            # safe: y2 fully read y1 already

    # Stage 3: DoubleConv's second SingleConv -> lane-dense (C_p, Lv) output.
    o_ref[...] = epilogue(conv(w2_ref, y_buf, base_s, k_dc), p2_ref)


# ----------------------------------------------------------------------------
# Wrapper: layout plumbing in XLA, one pallas_call for the whole Decoder.
# ----------------------------------------------------------------------------
def decoder_forward(params, x1, x2, *, scale_factor, dilation, eps=1e-5,
                    mxu_dtype=jnp.bfloat16):
    n, c_in, _ = x1.shape
    n2, c2, l = x2.shape
    assert n == n2

    w_up, w_dc1, w_dc2 = params["up_w"], params["dc1_w"], params["dc2_w"]
    c_out, c_in_w, k_up = w_up.shape
    assert c_in_w == c_in
    assert w_dc1.shape[0] == c_out and w_dc1.shape[1] == c2 + c_out
    k_dc = w_dc1.shape[2]
    assert w_dc2.shape == (c_out, c_out, k_dc)

    c_out_p = _round_up(c_out, 8)         # pad output channels to sublane count
    c_in_p = _round_up(c_in, 8)
    c2_p = _round_up(c2, 8)

    # nn.Upsample(scale_factor), nearest, on the temporal axis (wrapper prologue).
    # TODO(synk): fold the nearest upsample + strip packing into the kernel DMA to
    # remove this extra HBM round trip at production N*L.
    x1_up = jnp.repeat(x1, scale_factor, axis=-1)
    assert x1_up.shape[-1] == l            # mirrors the torch assert

    # Strip-layout geometry shared by all stages.  PyTorch 'same' padding:
    # total = dilation*(K-1), left = total//2, rest right.
    t_up = dilation * (k_up - 1)
    t_dc = dilation * (k_dc - 1)
    t_max = max(t_up, t_dc)
    left_up = t_up // 2
    left_dc = t_dc // 2
    sp = l + t_max                         # per-example strip (data + zero gap)
    lv = _round_up(n * sp, 128)            # lane-dense compute/output width
    lb_in = lv + t_max                     # input-buffer width (tap headroom)
    guard = _round_up(left_dc, 128)        # 128-aligned zero guard band in scratch
    lb_s = guard + lv + t_max              # scratch-buffer width

    def to_strips(x, left, c_pad):
        nb, c, ll = x.shape
        strips = jnp.pad(x, ((0, 0), (0, c_pad - c), (left, sp - left - ll)))
        flat = strips.transpose(1, 0, 2).reshape(c_pad, nb * sp)
        flat = jnp.pad(flat, ((0, 0), (0, lb_in - nb * sp)))
        return flat.astype(mxu_dtype)      # bf16 in HBM: half the DMA bytes

    b1 = to_strips(x1_up, left_up, c_in_p)   # stage-1 padded input
    x2b = to_strips(x2, left_dc, c2_p)       # skip connection, pre-padded for dc1

    # Valid-lane mask: 1.0 on real output positions, 0.0 on padding lanes.
    lane = jnp.arange(lv)
    valid = ((lane < n * sp) & ((lane % sp) < l)).astype(jnp.float32)
    mask_row = valid[None, :]                       # (1, lv)  for the stash
    mask_col = jnp.tile(valid[:, None], (1, 8))     # (lv, 8)  RHS for MXU reductions

    # Weight layout: (C_out, C_in, K) -> (K, C_out_p, C_in_p), bf16, zero padded,
    # matching the per-tap accumulated dots inside the kernel.
    def pack_w(w, ci_pad):
        co, ci, k = w.shape
        wt = jnp.transpose(w, (2, 0, 1))
        wt = jnp.pad(wt, ((0, 0), (0, c_out_p - co), (0, ci_pad - ci)))
        return wt.astype(mxu_dtype)

    w_up_t = pack_w(w_up, c_in_p)
    w1a = pack_w(w_dc1[:, :c2, :], c2_p)            # channels from x2
    w1b = pack_w(w_dc1[:, c2:, :], c_out_p)         # channels from upsampled branch
    w2t = pack_w(w_dc2, c_out_p)

    def pack_p(prefix):                             # rows = [bias; gamma; beta]
        def pad(v):
            return jnp.pad(v.astype(jnp.float32), (0, c_out_p - c_out))
        return jnp.concatenate(
            [pad(params[prefix + "_b"]), pad(params[prefix + "_g"]),
             pad(params[prefix + "_beta"])]).reshape(3 * c_out_p, 1)

    p_up, p1, p2 = pack_p("up"), pack_p("dc1"), pack_p("dc2")

    inputs = (b1, x2b, mask_row, mask_col, w_up_t, w1a, w1b, w2t, p_up, p1, p2)

    flops = 2 * n * l * c_out * (c_in * k_up + (c2 + c_out) * k_dc + c_out * k_dc)
    in_bytes = sum(a.size * a.dtype.itemsize for a in inputs)
    out_bytes = c_out_p * lv * 4
    scratch_bytes = c_out_p * lb_s * 2
    vmem_limit = int(min(64 * 2**20,
                         max(16 * 2**20,
                             4 * (in_bytes + out_bytes + scratch_bytes))))

    kernel = functools.partial(
        _decoder_kernel, inv_count=1.0 / float(n * l), lv=lv, dil=dilation,
        k_up=k_up, k_dc=k_dc, guard=guard, left_dc=left_dc, t_max=t_max, eps=eps)

    vmem = pl.BlockSpec(memory_space=pltpu.MemorySpace.VMEM)
    out = pl.pallas_call(
        kernel,
        out_shape=jax.ShapeDtypeStruct((c_out_p, lv), jnp.float32),
        in_specs=[vmem] * len(inputs),
        out_specs=vmem,
        scratch_shapes=[pltpu.VMEM((c_out_p, lb_s), mxu_dtype)],
        compiler_params=pltpu.CompilerParams(vmem_limit_bytes=vmem_limit),
        cost_estimate=pl.CostEstimate(flops=flops, transcendentals=3 * c_out_p,
                                      bytes_accessed=in_bytes + out_bytes),
    )(*inputs)

    # De-strip the lane-dense kernel output: (C_out_p, Lv) -> (N, C_out, L).
    out = out[:c_out, :n * sp].reshape(c_out, n, sp)[:, :, :l].transpose(1, 0, 2)
    return out


# ----------------------------------------------------------------------------
# Pure-JAX reference (for a loose correctness check) and parameter init.
# ----------------------------------------------------------------------------
def _reference_forward(params, x1, x2, *, scale_factor, dilation, eps=1e-5):
    def conv(x, w, b):
        k = w.shape[-1]
        t = dilation * (k - 1)
        left = t // 2
        y = jax.lax.conv_general_dilated(
            x, w, window_strides=(1,), padding=[(left, t - left)],
            rhs_dilation=(dilation,), dimension_numbers=("NCH", "OIH", "NCH"),
            precision=jax.lax.Precision.HIGHEST)
        return y + b[None, :, None]

    def bn(y, g, beta):
        mean = jnp.mean(y, axis=(0, 2), keepdims=True)
        var = jnp.mean((y - mean) ** 2, axis=(0, 2), keepdims=True)
        return (y - mean) * jax.lax.rsqrt(var + eps) * g[None, :, None] + beta[None, :, None]

    x1 = jnp.repeat(x1, scale_factor, axis=-1)
    y = bn(jnp.maximum(conv(x1, params["up_w"], params["up_b"]), 0.0),
           params["up_g"], params["up_beta"])
    x = jnp.concatenate([x2, y], axis=1)
    y = bn(jnp.maximum(conv(x, params["dc1_w"], params["dc1_b"]), 0.0),
           params["dc1_g"], params["dc1_beta"])
    y = bn(jnp.maximum(conv(y, params["dc2_w"], params["dc2_b"]), 0.0),
           params["dc2_g"], params["dc2_beta"])
    return y


def _init_conv(key, c_out, c_in, k):
    # PyTorch Conv1d default init: U(-bound, bound), bound = 1/sqrt(C_in * K).
    bound = 1.0 / jnp.sqrt(c_in * k)
    kw, kb = jax.random.split(key)
    w = jax.random.uniform(kw, (c_out, c_in, k), jnp.float32, -bound, bound)
    b = jax.random.uniform(kb, (c_out,), jnp.float32, -bound, bound)
    return w, b


def init_decoder_params(key, in_channels, out_channels, scale_factor, kernel_size):
    k0, k1, k2 = jax.random.split(key, 3)
    up_w, up_b = _init_conv(k0, out_channels, in_channels, scale_factor)
    dc1_w, dc1_b = _init_conv(k1, out_channels, in_channels, kernel_size)
    dc2_w, dc2_b = _init_conv(k2, out_channels, out_channels, kernel_size)
    ones = jnp.ones((out_channels,), jnp.float32)    # BatchNorm1d default weight
    zeros = jnp.zeros((out_channels,), jnp.float32)  # BatchNorm1d default bias
    return {
        "up_w": up_w, "up_b": up_b, "up_g": ones, "up_beta": zeros,
        "dc1_w": dc1_w, "dc1_b": dc1_b, "dc1_g": ones, "dc1_beta": zeros,
        "dc2_w": dc2_w, "dc2_b": dc2_b, "dc2_g": ones, "dc2_beta": zeros,
    }


if __name__ == "__main__":
    # Decoder(in_channels=8, out_channels=4, scale_factor=2,
    #         activation=nn.ReLU(), kernel_size=3, padding='same', dilation=1)
    in_channels, out_channels = 8, 4
    scale_factor, kernel_size, dilation = 2, 3, 1
    batch, length = 2, 16

    key = jax.random.PRNGKey(0)
    kp, kx1, kx2 = jax.random.split(key, 3)
    params = init_decoder_params(kp, in_channels, out_channels,
                                 scale_factor, kernel_size)

    # x1: decoder feature map (to be upsampled); x2: encoder skip connection.
    x1 = jax.random.normal(kx1, (batch, in_channels, length), jnp.float32)
    x2 = jax.random.normal(
        kx2, (batch, in_channels - out_channels, length * scale_factor),
        jnp.float32)

    fwd = jax.jit(functools.partial(decoder_forward,
                                    scale_factor=scale_factor, dilation=dilation))
    out = jax.block_until_ready(fwd(params, x1, x2))

    assert out.shape == (batch, out_channels, length * scale_factor)
    assert out.dtype == jnp.float32

    # Loose tolerance: the kernel intentionally chains bf16 MXU inputs AND bf16
    # inter-stage activations (f32 accumulation / f32 BN statistics).
    ref = _reference_forward(params, x1, x2,
                             scale_factor=scale_factor, dilation=dilation)
    max_err = float(jnp.max(jnp.abs(out - ref)))
    assert jnp.allclose(out, ref, atol=2e-1, rtol=2e-1), max_err

    print("KERNEL_OK")
</pallas_src>

<mosaic_0001>
module attributes {stable_mosaic.version = 11 : i64} {
  func.func @_decoder_kernel(%arg0: memref<8x130xbf16, #tpu.memory_space<vmem>>, %arg1: memref<8x130xbf16, #tpu.memory_space<vmem>>, %arg2: memref<1x128xf32, #tpu.memory_space<vmem>>, %arg3: memref<128x8xf32, #tpu.memory_space<vmem>>, %arg4: memref<2x8x8xbf16, #tpu.memory_space<vmem>>, %arg5: memref<3x8x8xbf16, #tpu.memory_space<vmem>>, %arg6: memref<3x8x8xbf16, #tpu.memory_space<vmem>>, %arg7: memref<3x8x8xbf16, #tpu.memory_space<vmem>>, %arg8: memref<24x1xf32, #tpu.memory_space<vmem>>, %arg9: memref<24x1xf32, #tpu.memory_space<vmem>>, %arg10: memref<24x1xf32, #tpu.memory_space<vmem>>, %arg11: memref<8x128xf32, #tpu.memory_space<vmem>>, %arg12: memref<8x258xbf16, #tpu.memory_space<vmem>>) attributes {dimension_semantics = [], scalar_prefetch = 0 : i64, scratch_operands = 1 : i64, tpu.core_type = #tpu.core_type<tc>} {
    %c0 = arith.constant 0 : index
    %c0_0 = arith.constant 0 : index
    %0 = vector.load %arg2[%c0, %c0_0] : memref<1x128xf32, #tpu.memory_space<vmem>>, vector<1x128xf32>
    %c0_1 = arith.constant 0 : index
    %c0_2 = arith.constant 0 : index
    %1 = vector.load %arg3[%c0_1, %c0_2] : memref<128x8xf32, #tpu.memory_space<vmem>>, vector<128x8xf32>
    %cst = arith.constant 0.000000e+00 : bf16
    %2 = vector.broadcast %cst : bf16 to vector<8x128xbf16>
    %c0_3 = arith.constant 0 : index
    %c0_4 = arith.constant 0 : index
    %3 = vector.load %arg12[%c0_3, %c0_4] : memref<8x258xbf16, #tpu.memory_space<vmem>>, vector<8x128xbf16>
    tpu.vector_store %arg12[%c0_3, %c0_4], %2 {strides = array<i32>} : memref<8x258xbf16, #tpu.memory_space<vmem>>, vector<8x128xbf16>,
    %cst_5 = arith.constant 0.000000e+00 : bf16
    %4 = vector.broadcast %cst_5 : bf16 to vector<8x2xbf16>
    %c0_6 = arith.constant 0 : index
    %c256 = arith.constant 256 : index
    %5 = vector.load %arg12[%c0_6, %c256] : memref<8x258xbf16, #tpu.memory_space<vmem>>, vector<8x2xbf16>
    tpu.vector_store %arg12[%c0_6, %c256], %4 {strides = array<i32>} : memref<8x258xbf16, #tpu.memory_space<vmem>>, vector<8x2xbf16>,
    %c0_7 = arith.constant 0 : index
    %c0_8 = arith.constant 0 : index
    %c0_9 = arith.constant 0 : index
    %6 = vector.load %arg4[%c0_7, %c0_8, %c0_9] : memref<2x8x8xbf16, #tpu.memory_space<vmem>>, vector<1x8x8xbf16>
    %7 = vector.shape_cast %6 : vector<1x8x8xbf16> to vector<8x8xbf16>
    %c0_10 = arith.constant 0 : index
    %c0_11 = arith.constant 0 : index
    %8 = vector.load %arg0[%c0_10, %c0_11] : memref<8x130xbf16, #tpu.memory_space<vmem>>, vector<8x128xbf16>
    %cst_12 = arith.constant dense<0.000000e+00> : vector<8x128xf32>
    %9 = tpu.matmul %7, %8, %cst_12 {dimension_numbers = #tpu.dot_dimension_numbers<[1], [0], [0], [1], [0, 0, 1, 1], [], []>} : vector<8x8xbf16>, vector<8x128xbf16>, vector<8x128xf32> -> vector<8x128xf32>
    %c1 = arith.constant 1 : index
    %c0_13 = arith.constant 0 : index
    %c0_14 = arith.constant 0 : index
    %10 = vector.load %arg4[%c1, %c0_13, %c0_14] : memref<2x8x8xbf16, #tpu.memory_space<vmem>>, vector<1x8x8xbf16>
    %11 = vector.shape_cast %10 : vector<1x8x8xbf16> to vector<8x8xbf16>
    %c0_15 = arith.constant 0 : index
    %c1_16 = arith.constant 1 : index
    %12 = vector.load %arg0[%c0_15, %c1_16] : memref<8x130xbf16, #tpu.memory_space<vmem>>, vector<8x128xbf16>
    %cst_17 = arith.constant dense<0.000000e+00> : vector<8x128xf32>
    %13 = tpu.matmul %11, %12, %cst_17 {dimension_numbers = #tpu.dot_dimension_numbers<[1], [0], [0], [1], [0, 0, 1, 1], [], []>} : vector<8x8xbf16>, vector<8x128xbf16>, vector<8x128xf32> -> vector<8x128xf32>
    %14 = arith.addf %9, %13 : vector<8x128xf32>
    %c0_18 = arith.constant 0 : index
    %c0_19 = arith.constant 0 : index
    %15 = vector.load %arg8[%c0_18, %c0_19] : memref<24x1xf32, #tpu.memory_space<vmem>>, vector<8x1xf32>
    %c8 = arith.constant 8 : index
    %c0_20 = arith.constant 0 : index
    %16 = vector.load %arg8[%c8, %c0_20] : memref<24x1xf32, #tpu.memory_space<vmem>>, vector<8x1xf32>
    %c16 = arith.constant 16 : index
    %c0_21 = arith.constant 0 : index
    %17 = vector.load %arg8[%c16, %c0_21] : memref<24x1xf32, #tpu.memory_space<vmem>>, vector<8x1xf32>
    %18 = vector.broadcast %15 : vector<8x1xf32> to vector<8x128xf32>
    %19 = arith.addf %14, %18 : vector<8x128xf32>
    %cst_22 = arith.constant 0.000000e+00 : f32
    %20 = vector.broadcast %cst_22 : f32 to vector<8x128xf32>
    %21 = arith.maximumf %19, %20 : vector<8x128xf32>
    %cst_23 = arith.constant dense<0.000000e+00> : vector<8x8xf32>
    %22 = tpu.matmul %21, %1, %cst_23 {dimension_numbers = #tpu.dot_dimension_numbers<[1], [0], [0], [1], [0, 0, 1, 1], [], []>} : vector<8x128xf32>, vector<128x8xf32>, vector<8x8xf32> -> vector<8x8xf32>
    %23 = vector.extract_strided_slice %22 {offsets = [0, 0], sizes = [8, 1], strides = [1, 1]} : vector<8x8xf32> to vector<8x1xf32>
    %24 = arith.mulf %21, %21 : vector<8x128xf32>
    %cst_24 = arith.constant dense<0.000000e+00> : vector<8x8xf32>
    %25 = tpu.matmul %24, %1, %cst_24 {dimension_numbers = #tpu.dot_dimension_numbers<[1], [0], [0], [1], [0, 0, 1, 1], [], []>} : vector<8x128xf32>, vector<128x8xf32>, vector<8x8xf32> -> vector<8x8xf32>
    %26 = vector.extract_strided_slice %25 {offsets = [0, 0], sizes = [8, 1], strides = [1, 1]} : vector<8x8xf32> to vector<8x1xf32>
    %cst_25 = arith.constant 1.562500e-02 : f32
    %27 = vector.broadcast %cst_25 : f32 to vector<8x1xf32>
    %28 = arith.mulf %23, %27 : vector<8x1xf32>
    %cst_26 = arith.constant 1.562500e-02 : f32
    %29 = vector.broadcast %cst_26 : f32 to vector<8x1xf32>
    %30 = arith.mulf %26, %29 : vector<8x1xf32>
    %31 = arith.mulf %28, %28 : vector<8x1xf32>
    %32 = arith.subf %30, %31 : vector<8x1xf32>
    %cst_27 = arith.constant 0.000000e+00 : f32
    %33 = vector.broadcast %cst_27 : f32 to vector<8x1xf32>
    %34 = arith.maximumf %32, %33 : vector<8x1xf32>
    %cst_28 = arith.constant 9.99999974E-6 : f32
    %35 = vector.broadcast %cst_28 : f32 to vector<8x1xf32>
    %36 = arith.addf %34, %35 : vector<8x1xf32>
    %37 = math.rsqrt %36 : vector<8x1xf32>
    %38 = arith.mulf %37, %16 : vector<8x1xf32>
    %39 = arith.mulf %28, %38 : vector<8x1xf32>
    %40 = arith.subf %17, %39 : vector<8x1xf32>
    %41 = vector.broadcast %38 : vector<8x1xf32> to vector<8x128xf32>
    %42 = arith.mulf %21, %41 : vector<8x128xf32>
    %43 = vector.broadcast %40 : vector<8x1xf32> to vector<8x128xf32>
    %44 = arith.addf %42, %43 : vector<8x128xf32>
    %45 = vector.broadcast %0 : vector<1x128xf32> to vector<8x128xf32>
    %46 = arith.mulf %44, %45 : vector<8x128xf32>
    %47 = arith.truncf %46 : vector<8x128xf32> to vector<8x128xbf16>
    %c0_29 = arith.constant 0 : index
    %c128 = arith.constant 128 : index
    %48 = vector.load %arg12[%c0_29, %c128] : memref<8x258xbf16, #tpu.memory_space<vmem>>, vector<8x128xbf16>
    tpu.vector_store %arg12[%c0_29, %c128], %47 {strides = array<i32>} : memref<8x258xbf16, #tpu.memory_space<vmem>>, vector<8x128xbf16>,
    %c0_30 = arith.constant 0 : index
    %c0_31 = arith.constant 0 : index
    %c0_32 = arith.constant 0 : index
    %49 = vector.load %arg5[%c0_30, %c0_31, %c0_32] : memref<3x8x8xbf16, #tpu.memory_space<vmem>>, vector<1x8x8xbf16>
    %50 = vector.shape_cast %49 : vector<1x8x8xbf16> to vector<8x8xbf16>
    %c0_33 = arith.constant 0 : index
    %c0_34 = arith.constant 0 : index
    %51 = vector.load %arg1[%c0_33, %c0_34] : memref<8x130xbf16, #tpu.memory_space<vmem>>, vector<8x128xbf16>
    %cst_35 = arith.constant dense<0.000000e+00> : vector<8x128xf32>
    %52 = tpu.matmul %50, %51, %cst_35 {dimension_numbers = #tpu.dot_dimension_numbers<[1], [0], [0], [1], [0, 0, 1, 1], [], []>} : vector<8x8xbf16>, vector<8x128xbf16>, vector<8x128xf32> -> vector<8x128xf32>
    %c1_36 = arith.constant 1 : index
    %c0_37 = arith.constant 0 : index
    %c0_38 = arith.constant 0 : index
    %53 = vector.load %arg5[%c1_36, %c0_37, %c0_38] : memref<3x8x8xbf16, #tpu.memory_space<vmem>>, vector<1x8x8xbf16>
    %54 = vector.shape_cast %53 : vector<1x8x8xbf16> to vector<8x8xbf16>
    %c0_39 = arith.constant 0 : index
    %c1_40 = arith.constant 1 : index
    %55 = vector.load %arg1[%c0_39, %c1_40] : memref<8x130xbf16, #tpu.memory_space<vmem>>, vector<8x128xbf16>
    %cst_41 = arith.constant dense<0.000000e+00> : vector<8x128xf32>
    %56 = tpu.matmul %54, %55, %cst_41 {dimension_numbers = #tpu.dot_dimension_numbers<[1], [0], [0], [1], [0, 0, 1, 1], [], []>} : vector<8x8xbf16>, vector<8x128xbf16>, vector<8x128xf32> -> vector<8x128xf32>
    %57 = arith.addf %52, %56 : vector<8x128xf32>
    %c2 = arith.constant 2 : index
    %c0_42 = arith.constant 0 : index
    %c0_43 = arith.constant 0 : index
    %58 = vector.load %arg5[%c2, %c0_42, %c0_43] : memref<3x8x8xbf16, #tpu.memory_space<vmem>>, vector<1x8x8xbf16>
    %59 = vector.shape_cast %58 : vector<1x8x8xbf16> to vector<8x8xbf16>
    %c0_44 = arith.constant 0 : index
    %c2_45 = arith.constant 2 : index
    %60 = vector.load %arg1[%c0_44, %c2_45] : memref<8x130xbf16, #tpu.memory_space<vmem>>, vector<8x128xbf16>
    %cst_46 = arith.constant dense<0.000000e+00> : vector<8x128xf32>
    %61 = tpu.matmul %59, %60, %cst_46 {dimension_numbers = #tpu.dot_dimension_numbers<[1], [0], [0], [1], [0, 0, 1, 1], [], []>} : vector<8x8xbf16>, vector<8x128xbf16>, vector<8x128xf32> -> vector<8x128xf32>
    %62 = arith.addf %57, %61 : vector<8x128xf32>
    %c0_47 = arith.constant 0 : index
    %c0_48 = arith.constant 0 : index
    %c0_49 = arith.constant 0 : index
    %63 = vector.load %arg6[%c0_47, %c0_48, %c0_49] : memref<3x8x8xbf16, #tpu.memory_space<vmem>>, vector<1x8x8xbf16>
    %64 = vector.shape_cast %63 : vector<1x8x8xbf16> to vector<8x8xbf16>
    %c0_50 = arith.constant 0 : index
    %c127 = arith.constant 127 : index
    %65 = vector.load %arg12[%c0_50, %c127] : memref<8x258xbf16, #tpu.memory_space<vmem>>, vector<8x128xbf16>
    %cst_51 = arith.constant dense<0.000000e+00> : vector<8x128xf32>
    %66 = tpu.matmul %64, %65, %cst_51 {dimension_numbers = #tpu.dot_dimension_numbers<[1], [0], [0], [1], [0, 0, 1, 1], [], []>} : vector<8x8xbf16>, vector<8x128xbf16>, vector<8x128xf32> -> vector<8x128xf32>
    %67 = arith.addf %62, %66 : vector<8x128xf32>
    %c1_52 = arith.constant 1 : index
    %c0_53 = arith.constant 0 : index
    %c0_54 = arith.constant 0 : index
    %68 = vector.load %arg6[%c1_52, %c0_53, %c0_54] : memref<3x8x8xbf16, #tpu.memory_space<vmem>>, vector<1x8x8xbf16>
    %69 = vector.shape_cast %68 : vector<1x8x8xbf16> to vector<8x8xbf16>
    %c0_55 = arith.constant 0 : index
    %c128_56 = arith.constant 128 : index
    %70 = vector.load %arg12[%c0_55, %c128_56] : memref<8x258xbf16, #tpu.memory_space<vmem>>, vector<8x128xbf16>
    %cst_57 = arith.constant dense<0.000000e+00> : vector<8x128xf32>
    %71 = tpu.matmul %69, %70, %cst_57 {dimension_numbers = #tpu.dot_dimension_numbers<[1], [0], [0], [1], [0, 0, 1, 1], [], []>} : vector<8x8xbf16>, vector<8x128xbf16>, vector<8x128xf32> -> vector<8x128xf32>
    %72 = arith.addf %67, %71 : vector<8x128xf32>
    %c2_58 = arith.constant 2 : index
    %c0_59 = arith.constant 0 : index
    %c0_60 = arith.constant 0 : index
    %73 = vector.load %arg6[%c2_58, %c0_59, %c0_60] : memref<3x8x8xbf16, #tpu.memory_space<vmem>>, vector<1x8x8xbf16>
    %74 = vector.shape_cast %73 : vector<1x8x8xbf16> to vector<8x8xbf16>
    %c0_61 = arith.constant 0 : index
    %c129 = arith.constant 129 : index
    %75 = vector.load %arg12[%c0_61, %c129] : memref<8x258xbf16, #tpu.memory_space<vmem>>, vector<8x128xbf16>
    %cst_62 = arith.constant dense<0.000000e+00> : vector<8x128xf32>
    %76 = tpu.matmul %74, %75, %cst_62 {dimension_numbers = #tpu.dot_dimension_numbers<[1], [0], [0], [1], [0, 0, 1, 1], [], []>} : vector<8x8xbf16>, vector<8x128xbf16>, vector<8x128xf32> -> vector<8x128xf32>
    %77 = arith.addf %72, %76 : vector<8x128xf32>
    %c0_63 = arith.constant 0 : index
    %c0_64 = arith.constant 0 : index
    %78 = vector.load %arg9[%c0_63, %c0_64] : memref<24x1xf32, #tpu.memory_space<vmem>>, vector<8x1xf32>
    %c8_65 = arith.constant 8 : index
    %c0_66 = arith.constant 0 : index
    %79 = vector.load %arg9[%c8_65, %c0_66] : memref<24x1xf32, #tpu.memory_space<vmem>>, vector<8x1xf32>
    %c16_67 = arith.constant 16 : index
    %c0_68 = arith.constant 0 : index
    %80 = vector.load %arg9[%c16_67, %c0_68] : memref<24x1xf32, #tpu.memory_space<vmem>>, vector<8x1xf32>
    %81 = vector.broadcast %78 : vector<8x1xf32> to vector<8x128xf32>
    %82 = arith.addf %77, %81 : vector<8x128xf32>
    %cst_69 = arith.constant 0.000000e+00 : f32
    %83 = vector.broadcast %cst_69 : f32 to vector<8x128xf32>
    %84 = arith.maximumf %82, %83 : vector<8x128xf32>
    %cst_70 = arith.constant dense<0.000000e+00> : vector<8x8xf32>
    %85 = tpu.matmul %84, %1, %cst_70 {dimension_numbers = #tpu.dot_dimension_numbers<[1], [0], [0], [1], [0, 0, 1, 1], [], []>} : vector<8x128xf32>, vector<128x8xf32>, vector<8x8xf32> -> vector<8x8xf32>
    %86 = vector.extract_strided_slice %85 {offsets = [0, 0], sizes = [8, 1], strides = [1, 1]} : vector<8x8xf32> to vector<8x1xf32>
    %87 = arith.mulf %84, %84 : vector<8x128xf32>
    %cst_71 = arith.constant dense<0.000000e+00> : vector<8x8xf32>
    %88 = tpu.matmul %87, %1, %cst_71 {dimension_numbers = #tpu.dot_dimension_numbers<[1], [0], [0], [1], [0, 0, 1, 1], [], []>} : vector<8x128xf32>, vector<128x8xf32>, vector<8x8xf32> -> vector<8x8xf32>
    %89 = vector.extract_strided_slice %88 {offsets = [0, 0], sizes = [8, 1], strides = [1, 1]} : vector<8x8xf32> to vector<8x1xf32>
    %cst_72 = arith.constant 1.562500e-02 : f32
    %90 = vector.broadcast %cst_72 : f32 to vector<8x1xf32>
    %91 = arith.mulf %86, %90 : vector<8x1xf32>
    %cst_73 = arith.constant 1.562500e-02 : f32
    %92 = vector.broadcast %cst_73 : f32 to vector<8x1xf32>
    %93 = arith.mulf %89, %92 : vector<8x1xf32>
    %94 = arith.mulf %91, %91 : vector<8x1xf32>
    %95 = arith.subf %93, %94 : vector<8x1xf32>
    %cst_74 = arith.constant 0.000000e+00 : f32
    %96 = vector.broadcast %cst_74 : f32 to vector<8x1xf32>
    %97 = arith.maximumf %95, %96 : vector<8x1xf32>
    %cst_75 = arith.constant 9.99999974E-6 : f32
    %98 = vector.broadcast %cst_75 : f32 to vector<8x1xf32>
    %99 = arith.addf %97, %98 : vector<8x1xf32>
    %100 = math.rsqrt %99 : vector<8x1xf32>
    %101 = arith.mulf %100, %79 : vector<8x1xf32>
    %102 = arith.mulf %91, %101 : vector<8x1xf32>
    %103 = arith.subf %80, %102 : vector<8x1xf32>
    %104 = vector.broadcast %101 : vector<8x1xf32> to vector<8x128xf32>
    %105 = arith.mulf %84, %104 : vector<8x128xf32>
    %106 = vector.broadcast %103 : vector<8x1xf32> to vector<8x128xf32>
    %107 = arith.addf %105, %106 : vector<8x128xf32>
    %108 = vector.broadcast %0 : vector<1x128xf32> to vector<8x128xf32>
    %109 = arith.mulf %107, %108 : vector<8x128xf32>
    %110 = arith.truncf %109 : vector<8x128xf32> to vector<8x128xbf16>
    %c0_76 = arith.constant 0 : index
    %c128_77 = arith.constant 128 : index
    %111 = vector.load %arg12[%c0_76, %c128_77] : memref<8x258xbf16, #tpu.memory_space<vmem>>, vector<8x128xbf16>
    tpu.vector_store %arg12[%c0_76, %c128_77], %110 {strides = array<i32>} : memref<8x258xbf16, #tpu.memory_space<vmem>>, vector<8x128xbf16>,
    %c0_78 = arith.constant 0 : index
    %c0_79 = arith.constant 0 : index
    %c0_80 = arith.constant 0 : index
    %112 = vector.load %arg7[%c0_78, %c0_79, %c0_80] : memref<3x8x8xbf16, #tpu.memory_space<vmem>>, vector<1x8x8xbf16>
    %113 = vector.shape_cast %112 : vector<1x8x8xbf16> to vector<8x8xbf16>
    %c0_81 = arith.constant 0 : index
    %c127_82 = arith.constant 127 : index
    %114 = vector.load %arg12[%c0_81, %c127_82] : memref<8x258xbf16, #tpu.memory_space<vmem>>, vector<8x128xbf16>
    %cst_83 = arith.constant dense<0.000000e+00> : vector<8x128xf32>
    %115 = tpu.matmul %113, %114, %cst_83 {dimension_numbers = #tpu.dot_dimension_numbers<[1], [0], [0], [1], [0, 0, 1, 1], [], []>} : vector<8x8xbf16>, vector<8x128xbf16>, vector<8x128xf32> -> vector<8x128xf32>
    %c1_84 = arith.constant 1 : index
    %c0_85 = arith.constant 0 : index
    %c0_86 = arith.constant 0 : index
    %116 = vector.load %arg7[%c1_84, %c0_85, %c0_86] : memref<3x8x8xbf16, #tpu.memory_space<vmem>>, vector<1x8x8xbf16>
    %117 = vector.shape_cast %116 : vector<1x8x8xbf16> to vector<8x8xbf16>
    %c0_87 = arith.constant 0 : index
    %c128_88 = arith.constant 128 : index
    %118 = vector.load %arg12[%c0_87, %c128_88] : memref<8x258xbf16, #tpu.memory_space<vmem>>, vector<8x128xbf16>
    %cst_89 = arith.constant dense<0.000000e+00> : vector<8x128xf32>
    %119 = tpu.matmul %117, %118, %cst_89 {dimension_numbers = #tpu.dot_dimension_numbers<[1], [0], [0], [1], [0, 0, 1, 1], [], []>} : vector<8x8xbf16>, vector<8x128xbf16>, vector<8x128xf32> -> vector<8x128xf32>
    %120 = arith.addf %115, %119 : vector<8x128xf32>
    %c2_90 = arith.constant 2 : index
    %c0_91 = arith.constant 0 : index
    %c0_92 = arith.constant 0 : index
    %121 = vector.load %arg7[%c2_90, %c0_91, %c0_92] : memref<3x8x8xbf16, #tpu.memory_space<vmem>>, vector<1x8x8xbf16>
    %122 = vector.shape_cast %121 : vector<1x8x8xbf16> to vector<8x8xbf16>
    %c0_93 = arith.constant 0 : index
    %c129_94 = arith.constant 129 : index
    %123 = vector.load %arg12[%c0_93, %c129_94] : memref<8x258xbf16, #tpu.memory_space<vmem>>, vector<8x128xbf16>
    %cst_95 = arith.constant dense<0.000000e+00> : vector<8x128xf32>
    %124 = tpu.matmul %122, %123, %cst_95 {dimension_numbers = #tpu.dot_dimension_numbers<[1], [0], [0], [1], [0, 0, 1, 1], [], []>} : vector<8x8xbf16>, vector<8x128xbf16>, vector<8x128xf32> -> vector<8x128xf32>
    %125 = arith.addf %120, %124 : vector<8x128xf32>
    %c0_96 = arith.constant 0 : index
    %c0_97 = arith.constant 0 : index
    %126 = vector.load %arg10[%c0_96, %c0_97] : memref<24x1xf32, #tpu.memory_space<vmem>>, vector<8x1xf32>
    %c8_98 = arith.constant 8 : index
    %c0_99 = arith.constant 0 : index
    %127 = vector.load %arg10[%c8_98, %c0_99] : memref<24x1xf32, #tpu.memory_space<vmem>>, vector<8x1xf32>
    %c16_100 = arith.constant 16 : index
    %c0_101 = arith.constant 0 : index
    %128 = vector.load %arg10[%c16_100, %c0_101] : memref<24x1xf32, #tpu.memory_space<vmem>>, vector<8x1xf32>
    %129 = vector.broadcast %126 : vector<8x1xf32> to vector<8x128xf32>
    %130 = arith.addf %125, %129 : vector<8x128xf32>
    %cst_102 = arith.constant 0.000000e+00 : f32
    %131 = vector.broadcast %cst_102 : f32 to vector<8x128xf32>
    %132 = arith.maximumf %130, %131 : vector<8x128xf32>
    %cst_103 = arith.constant dense<0.000000e+00> : vector<8x8xf32>
    %133 = tpu.matmul %132, %1, %cst_103 {dimension_numbers = #tpu.dot_dimension_numbers<[1], [0], [0], [1], [0, 0, 1, 1], [], []>} : vector<8x128xf32>, vector<128x8xf32>, vector<8x8xf32> -> vector<8x8xf32>
    %134 = vector.extract_strided_slice %133 {offsets = [0, 0], sizes = [8, 1], strides = [1, 1]} : vector<8x8xf32> to vector<8x1xf32>
    %135 = arith.mulf %132, %132 : vector<8x128xf32>
    %cst_104 = arith.constant dense<0.000000e+00> : vector<8x8xf32>
    %136 = tpu.matmul %135, %1, %cst_104 {dimension_numbers = #tpu.dot_dimension_numbers<[1], [0], [0], [1], [0, 0, 1, 1], [], []>} : vector<8x128xf32>, vector<128x8xf32>, vector<8x8xf32> -> vector<8x8xf32>
    %137 = vector.extract_strided_slice %136 {offsets = [0, 0], sizes = [8, 1], strides = [1, 1]} : vector<8x8xf32> to vector<8x1xf32>
    %cst_105 = arith.constant 1.562500e-02 : f32
    %138 = vector.broadcast %cst_105 : f32 to vector<8x1xf32>
    %139 = arith.mulf %134, %138 : vector<8x1xf32>
    %cst_106 = arith.constant 1.562500e-02 : f32
    %140 = vector.broadcast %cst_106 : f32 to vector<8x1xf32>
    %141 = arith.mulf %137, %140 : vector<8x1xf32>
    %142 = arith.mulf %139, %139 : vector<8x1xf32>
    %143 = arith.subf %141, %142 : vector<8x1xf32>
    %cst_107 = arith.constant 0.000000e+00 : f32
    %144 = vector.broadcast %cst_107 : f32 to vector<8x1xf32>
    %145 = arith.maximumf %143, %144 : vector<8x1xf32>
    %cst_108 = arith.constant 9.99999974E-6 : f32
    %146 = vector.broadcast %cst_108 : f32 to vector<8x1xf32>
    %147 = arith.addf %145, %146 : vector<8x1xf32>
    %148 = math.rsqrt %147 : vector<8x1xf32>
    %149 = arith.mulf %148, %127 : vector<8x1xf32>
    %150 = arith.mulf %139, %149 : vector<8x1xf32>
    %151 = arith.subf %128, %150 : vector<8x1xf32>
    %152 = vector.broadcast %149 : vector<8x1xf32> to vector<8x128xf32>
    %153 = arith.mulf %132, %152 : vector<8x128xf32>
    %154 = vector.broadcast %151 : vector<8x1xf32> to vector<8x128xf32>
    %155 = arith.addf %153, %154 : vector<8x128xf32>
    %c0_109 = arith.constant 0 : index
    %c0_110 = arith.constant 0 : index
    %156 = vector.load %arg11[%c0_109, %c0_110] : memref<8x128xf32, #tpu.memory_space<vmem>>, vector<8x128xf32>
    tpu.vector_store %arg11[%c0_109, %c0_110], %155 {strides = array<i32>} : memref<8x128xf32, #tpu.memory_space<vmem>>, vector<8x128xf32>,
    return
  }
}

</mosaic_0001>

<bundles_post_ra>
// kernel: decoder_forward.1
= control target key start
LH: loop header
LB: loop body
LE: loop exit
PB: predicated region body
PF: predicated region fallthrough
CT: control target
= control target key end

     0   :  { %vm79_vm0 = vcmask 1043456   ;;  %v1806_v1 = vmov 0.0   ;;  %vm1807_vm1 = vmmov 0   ;;  %vm75_vm2 = vcmask 64512   ;;  %s1809_s28 = smov 127   ;;  %s1812_s13 = smov 1   ;;  %s2200_s0 = inlined_call_operand.vmem [shape: bf16[8,130], index: 0, kind: input, shape index: {}]   ;;  %s2201_s4 = inlined_call_operand.vmem [shape: bf16[2,8,8], index: 4, kind: input, shape index: {}]   ;;  %s2202_s8 = inlined_call_operand.vmem [shape: f32[24,1], index: 8, kind: input, shape index: {}]   ;;  %s2203_s3 = inlined_call_operand.vmem [shape: f32[128,8], index: 3, kind: input, shape index: {}]   ;;  %s2204_s1 = inlined_call_operand.vmem [shape: bf16[8,130], index: 1, kind: input, shape index: {}]   ;;  %s2205_s5 = inlined_call_operand.vmem [shape: bf16[3,8,8], index: 5, kind: input, shape index: {}]   ;;  %s2206_s2 = inlined_call_operand.vmem [shape: f32[1,128], index: 2, kind: input, shape index: {}]   ;;  %s2207_s9 = inlined_call_operand.vmem [shape: f32[24,1], index: 9, kind: input, shape index: {}]   ;;  %s2208_s6 = inlined_call_operand.vmem [shape: bf16[3,8,8], index: 6, kind: input, shape index: {}]   ;;  %s2209_s7 = inlined_call_operand.vmem [shape: bf16[3,8,8], index: 7, kind: input, shape index: {}]   ;;  %s2210_s10 = inlined_call_operand.vmem [shape: f32[24,1], index: 10, kind: input, shape index: {}]   ;;  %s2211_s11 = inlined_call_operand.vmem [shape: f32[8,128], index: 11, kind: output, shape index: {}]  }
   0x1   :  { %v63_v0 = vld [vmem:[%s2200_s0] sm:$0xff]  ;;  %1365 = vmatprep.subr.bf16.mxu1 %v1806_v1  ;;  %1359 = vmatprep.subr.bf16.mxu0 %v1806_v1  ;;  %vm57_vm3 = vcmask 11264   ;;  %v1808_v8 = vmov 0   ;;  %v41_v9 = vld [vmem:[%s2203_s3 + $0x8] sm:$0xff]  ;;  %v1810_v12 = vmov 0.0|0.0   ;;  %v42_v13 = vld [vmem:[%s2203_s3 + $0x10] sm:$0xff] }
   0x2   :  { %v60_v2 = vld [vmem:[%s2200_s0] sm:$0xf]  ;;  %v1205_v3 = vcombine.low %v63_v0, %v63_v0  ;;  %1367 = vmatprep.mubr.msk.bf16.mxu1 %vm1807_vm1, %v1806_v1  ;;  %1361 = vmatprep.mubr.msk.bf16.mxu0 %vm1807_vm1, %v1806_v1  ;;  %56 = vst [vmem:[#allocation2] sm:$0xf] %v1808_v8  ;;  %v1206_v10 = vcombine.high %v63_v0, %v63_v0  ;;  %58 = vst.msk [vmem:[#allocation2 + $0x8] sm:$0xf] %vm57_vm3, %v1808_v8 }
   0x3   :  { %v127_v4 = vsel %vm79_vm0, %v60_v2, 0  ;;  %v169_v5 = vld [vmem:[%s2202_s8] sm:$0xff]  ;;  %1786 = vset.pattern.permute.xlu1 %v1808_v8  ;;  %1787 = vset.pattern.permute.xlu0 %v1808_v8  ;;  %v43_v14 = vld [vmem:[%s2203_s3 + $0x18] sm:$0xff]  ;;  %v45_v17 = vld [vmem:[%s2203_s3 + $0x28] sm:$0xff]  ;;  %vm73_vm4 = vcmask 1039360   ;;  %s1811_s0 = smov 126  }
   0x4   :  { %v40_v6 = vld [vmem:[%s2203_s3] sm:$0xff]  ;;  %1366 = vmatpush3.bf16.msra.mxu1 %v127_v4  ;;  %69 = vrot.lane.b32.xlu0 %v1205_v3, %s1809_s28  ;;  %v1914_v15 = vpack.c.bf16 %v43_v14, %v42_v13  ;;  %v46_v19 = vld [vmem:[%s2203_s3 + $0x30] sm:$0xff]  ;;  %v47_v20 = vld [vmem:[%s2203_s3 + $0x38] sm:$0xff]  ;;  %vm464_vm5 = vcmask 1031168   ;;  %vm524_vm6 = vcmask 7168  }
   0x5   :  { %v59_v7 = vld [vmem:[%s2201_s4] sm:$0xf]  ;;  %174 = vperm.xlu1 %1786, %v169_v5   ;;  %v1899_v11 = vpack.c.bf16 %v41_v9, %v40_v6  ;;  %1659 = vmatprep.subr.bf16.mxu1 %v1810_v12  ;;  %v1934_v21 = vpack.c.bf16 %v47_v20, %v46_v19  ;;  %v49_v23 = vld [vmem:[%s2203_s3 + $0x48] sm:$0xff]  ;;  %v50_v25 = vld [vmem:[%s2203_s3 + $0x50] sm:$0xff] }
   0x6   :  { %v44_v16 = vld [vmem:[%s2203_s3 + $0x20] sm:$0xff]  ;;  %v51_v26 = vld [vmem:[%s2203_s3 + $0x58] sm:$0xff]  ;;  %v53_v34 = vld [vmem:[%s2203_s3 + $0x68] sm:$0xff] }
   0x7   :  { %1368 = vmatmul.mubr.msk.bf16.vlgmr.msra.gmra.mrb[0].mxu1 %vm75_vm2, %v59_v7  ;;  %v1924_v18 = vpack.c.bf16 %v45_v17, %v44_v16  ;;  %v48_v22 = vld [vmem:[%s2203_s3 + $0x40] sm:$0xff]  ;;  %v1954_v27 = vpack.c.bf16 %v51_v26, %v50_v25  ;;  %v54_v36 = vld [vmem:[%s2203_s3 + $0x70] sm:$0xff]  ;;  %v55_v37 = vld [vmem:[%s2203_s3 + $0x78] sm:$0xff] }
   0x8   :  { %1661 = vmatpush3.bf16.msra.mxu1 %v1899_v11  ;;  %1438 = vmatprep.mubr.msk.f32.mxu1 %vm1807_vm1, %v1806_v1  ;;  %v1944_v24 = vpack.c.bf16 %v49_v23, %v48_v22  ;;  %v1204_v32 = vld [vmem:[%s2201_s4 + $0x4] sm:$0xf]  ;;  %v1997_v38 = vpack.c.bf16 %v55_v37, %v54_v36  ;;  %v170_v62 = vld [vmem:[%s2202_s8 + $0x8] sm:$0xff]  ;;  %v171_v3 = vld [vmem:[%s2202_s8 + $0x10] sm:$0xff] }
   0x9   :  { %71 = vrot.lane.b32.xlu0 %v1206_v10, %s1809_s28  ;;  %1662 = vmatprep.subr.bf16.mxu1 %v1810_v12  ;;  %v52_v33 = vld [vmem:[%s2203_s3 + $0x60] sm:$0xff] }
   0xa   :  { %v1985_v35 = vpack.c.bf16 %v53_v34, %v52_v33  ;;  %v355_v0 = vld [vmem:[%s2204_s1] sm:$0xff] }
   0xb   :  { %v1211_v5 = vcombine.low %v355_v0, %v355_v0  ;;  %v1212_v7 = vcombine.high %v355_v0, %v355_v0  ;;  %v352_v8 = vld [vmem:[%s2204_s1] sm:$0xf] }
   0xc   :  { %1664 = vmatpush3.bf16.msra.mxu1 %v1914_v15  ;;  %v416_v9 = vsel %vm79_vm0, %v352_v8, 0  ;;  %v351_v10 = vld [vmem:[%s2205_s5] sm:$0xf] }
   0xd   :  { %1665 = vmatprep.subr.bf16.mxu1 %v1810_v12  ;;  %v2032_v17 = vld [vmem:[%s2206_s2] ss:$0 sm:$0xff] }
  0x10   :  { %1667 = vmatpush3.bf16.msra.mxu1 %v1924_v18 }
  0x11   :  { %1668 = vmatprep.subr.bf16.mxu1 %v1810_v12 }
  0x14   :  { %1670 = vmatpush3.bf16.msra.mxu1 %v1934_v21 }
  0x15   :  { %1671 = vmatprep.subr.bf16.mxu1 %v1810_v12 }
  0x18   :  { %1673 = vmatpush3.bf16.msra.mxu1 %v1944_v24 }
  0x19   :  { %1674 = vmatprep.subr.bf16.mxu1 %v1810_v12 }
  0x1c   :  { %1676 = vmatpush3.bf16.msra.mxu1 %v1954_v27 }
  0x1d   :  { %1677 = vmatprep.subr.bf16.mxu1 %v1810_v12 }
  0x20   :  { %1679 = vmatpush3.bf16.msra.mxu1 %v1985_v35 }
  0x21   :  { %1680 = vmatprep.subr.bf16.mxu1 %v1810_v12 }
  0x24   :  { %1682 = vmatpush3.bf16.msra.mxu1 %v1997_v38 }
  0x25   :  { %1447 = vmatprep.subr.bf16.mxu1 %v1806_v1 }
  0x76   :  { %v70_v28 = vpop.permute.xlu0 %69 }
  0x7b   :  { %v72_v29 = vpop.permute.xlu0 %71 }
  0x7c   :  { %v74_v30 = vsel %vm73_vm4, %v70_v28, %v72_v29 }
  0x7d   :  { %v81_v31 = vsel %vm79_vm0, %v74_v30, 0  ;;  %v1210_v30 = vld [vmem:[%s2205_s5 + $0x4] sm:$0xf] }
  0x7e   :  { %1360 = vmatpush3.bf16.msra.mxu0 %v81_v31 }
  0x7f   :  { %1635 = vmatprep.subr.bf16.mxu0 %v1810_v12 }
  0x81   :  { %1362 = vmatmul.mubr.msk.bf16.vlgmr.msra.gmra.mrb[0].mxu0 %vm75_vm2, %v1204_v32 }
  0x82   :  { %1637 = vmatpush3.bf16.msra.mxu0 %v1899_v11  ;;  %1403 = vmatprep.mubr.msk.f32.mxu0 %vm1807_vm1, %v1806_v1 }
  0x83   :  { %1638 = vmatprep.subr.bf16.mxu0 %v1810_v12 }
  0x84   :  { %v175_v44 = vpop.permute.xlu1 %174 }
  0x86   :  { %1640 = vmatpush3.bf16.msra.mxu0 %v1914_v15 }
  0x87   :  { %1641 = vmatprep.subr.bf16.mxu0 %v1810_v12 }
  0x8a   :  { %1643 = vmatpush3.bf16.msra.mxu0 %v1924_v18 }
  0x8b   :  { %1644 = vmatprep.subr.bf16.mxu0 %v1810_v12 }
  0x8e   :  { %1646 = vmatpush3.bf16.msra.mxu0 %v1934_v21 }
  0x8f   :  { %1647 = vmatprep.subr.bf16.mxu0 %v1810_v12 }
  0x92   :  { %1649 = vmatpush3.bf16.msra.mxu0 %v1944_v24 }
  0x93   :  { %1650 = vmatprep.subr.bf16.mxu0 %v1810_v12 }
  0x96   :  { %1652 = vmatpush3.bf16.msra.mxu0 %v1954_v27 }
  0x97   :  { %1653 = vmatprep.subr.bf16.mxu0 %v1810_v12 }
  0x9a   :  { %1655 = vmatpush3.bf16.msra.mxu0 %v1985_v35 }
  0x9b   :  { %1656 = vmatprep.subr.bf16.mxu0 %v1810_v12 }
  0x9e   :  { %1658 = vmatpush3.bf16.msra.mxu0 %v1997_v38 }
  0x9f   :  { %1441 = vmatprep.subr.bf16.mxu0 %v1806_v1 }
  0xda   :  { %v163_v39 = vpop.f32.mrb[0].mxu1 }
  0xdb   :  { %v1369_v40 = vpop.f32.mrb[1].mxu1 }
  0xdc   :  { %v166_v41 = vpop.f32.mrb[2].mxu1 }
  0xdd   :  { %v1370_v42 = vpop.f32.mrb[3].mxu1 }
 0x154   :  { %v117_v43 = vpop.f32.mrb[0].mxu0 }
 0x155   :  { %v164_v45 = vadd.f32 %v163_v39, %v117_v43  ;;  %v1363_v46 = vpop.f32.mrb[1].mxu0  ;;  %v1215_v39 = vld [vmem:[%s2205_s5 + $0x8] sm:$0xf] }
 0x156   :  { %v120_v47 = vpop.f32.mrb[2].mxu0  ;;  %v1220_v46 = vld [vmem:[%s2208_s6 + $0x4] sm:$0xf] }
 0x157   :  { %v177_v48 = vadd.f32 %v175_v44, %v164_v45  ;;  %v1364_v49 = vpop.f32.mrb[3].mxu0  ;;  %v683_v45 = vld [vmem:[%s2207_s9] sm:$0xff] }
 0x159   :  { %v178_v50 = vmax.f32 %v177_v48, 0.0 }
 0x15b   :  { %v249_v51 = vmul.f32 %v178_v50, %v178_v50  ;;  %1404 = vmatmul.mubr.f32.vlgmr.msra.gmra.mrb[4].mxu0 %v178_v50 }
 0x15c   :  { %1443 = vmatprep.mubr.msk.bf16.mxu0 %vm1807_vm1, %v1806_v1 }
 0x15d   :  { %1439 = vmatmul.mubr.f32.vlgmr.msra.gmra.mrb[4].mxu1 %v249_v51 }
 0x15e   :  { %1449 = vmatprep.mubr.msk.bf16.mxu1 %vm1807_vm1, %v1806_v1  ;;  %1448 = vmatpush3.bf16.msra.mxu1 %v416_v9 }
 0x15f   :  { %1459 = vmatprep.subr.bf16.mxu1 %v1806_v1 }
 0x161   :  { %1450 = vmatmul.mubr.msk.bf16.vlgmr.msra.gmra.mrb[8].mxu1 %vm75_vm2, %v351_v10 }
 0x162   :  { %1461 = vmatprep.mubr.msk.bf16.mxu1 %vm1807_vm1, %v1806_v1 }
 0x22e   :  { %v245_v52 = vpop.f32.mrb[4].mxu0 }
 0x22f   :  { %v320_v53 = vmul.f32 0.015625, %v245_v52  ;;  %v1405_v54 = vpop.f32.mrb[5].mxu0 }
 0x230   :  { %v316_v55 = vpop.f32.mrb[4].mxu1 }
 0x231   :  { %v322_v56 = vmul.f32 %v320_v53, %v320_v53  ;;  %v321_v57 = vmul.f32 0.015625, %v316_v55  ;;  %v1440_v58 = vpop.f32.mrb[5].mxu1  ;;  %v513_v55 = vld [vmem:[%s2208_s6] sm:$0xf] }
 0x233   :  { %v323_v59 = vsub.f32 %v321_v57, %v322_v56 }
 0x234   :  { %v452_v47 = vpop.f32.mrb[8].mxu1 }
 0x235   :  { %v324_v60 = vmax.f32 %v323_v59, 0.0  ;;  %v1451_v48 = vpop.f32.mrb[9].mxu1 }
 0x236   :  { %v455_v49 = vpop.f32.mrb[10].mxu1 }
 0x237   :  { %v325_v61 = vadd.f32 1e-05, %v324_v60  ;;  %v1222_v60 = vld [vmem:[%s2208_s6 + $0x8] sm:$0xf] }
 0x239   :  { %1800 = vrsqrt.f32 %v325_v61 }
 0x243   :  { %v1801_v63 = vpop.eup %1800 }
 0x244   :  { %v327_v2 = vmul.f32 %v1801_v63, %v170_v62 }
 0x246   :  { %332 = vperm.xlu1 %1786, %v327_v2   ;;  %v328_v4 = vmul.f32 %v327_v2, %v320_v53 }
 0x248   :  { %v329_v6 = vsub.f32 %v171_v3, %v328_v4 }
 0x24a   :  { %338 = vperm.xlu0 %1787, %v329_v6   ;;  %361 = vrot.lane.b32.xlu1 %v1211_v5, %s1809_s28 }
 0x24e   :  { %363 = vrot.lane.b32.xlu1 %v1212_v7, %s1809_s28  ;;  %460 = vrot.lane.b32.xlu0 %v1211_v5, %s1811_s0 }
 0x252   :  { %462 = vrot.lane.b32.xlu1 %v1212_v7, %s1811_s0 }
 0x2c5   :  { %v333_v13 = vpop.permute.xlu1 %332 }
 0x2c6   :  { %v335_v14 = vmul.f32 %v333_v13, %v178_v50  ;;  %v1452_v50 = vpop.f32.mrb[11].mxu1 }
 0x2c7   :  { %v685_v50 = vld [vmem:[%s2207_s9 + $0x10] sm:$0xff] }
 0x2c9   :  { %v362_v16 = vpop.permute.xlu1 %361  ;;  %v339_v19 = vpop.permute.xlu0 %338 }
 0x2ca   :  { %v341_v20 = vadd.f32 %v339_v19, %v335_v14 }
 0x2cc   :  { %v348_v22 = vmul.f32 %v2032_v17, %v341_v20 }
 0x2cd   :  { %v364_v23 = vpop.permute.xlu1 %363  ;;  %v461_v29 = vpop.permute.xlu0 %460 }
 0x2ce   :  { %v349_v25 = vpack.c.bf16 %v348_v22, %v348_v22  ;;  %v365_v26 = vsel %vm73_vm4, %v362_v16, %v364_v23 }
 0x2cf   :  { %v370_v28 = vsel %vm79_vm0, %v365_v26, 0 }
 0x2d0   :  { %350 = vst [vmem:[#allocation2 + $0x4] sm:$0xf] %v349_v25  ;;  %1442 = vmatpush3.bf16.msra.mxu0 %v370_v28 }
 0x2d1   :  { %v463_v31 = vpop.permute.xlu1 %462  ;;  %1453 = vmatprep.subr.bf16.mxu0 %v1806_v1 }
 0x2d2   :  { %v465_v32 = vsel %vm464_vm5, %v461_v29, %v463_v31 }
 0x2d3   :  { %1444 = vmatmul.mubr.msk.bf16.vlgmr.msra.gmra.mrb[8].mxu0 %vm75_vm2, %v1210_v30  ;;  %v470_v33 = vsel %vm79_vm0, %v465_v32, 0 }
 0x2d4   :  { %1454 = vmatpush3.bf16.msra.mxu0 %v470_v33  ;;  %1455 = vmatprep.mubr.msk.bf16.mxu0 %vm1807_vm1, %v1806_v1 }
 0x2d5   :  { %1465 = vmatprep.subr.bf16.mxu0 %v1806_v1 }
 0x2d7   :  { %v514_v34 = vld [vmem:[#allocation2] sm:$0xff] }
 0x2d8   :  { %v1218_v36 = vcombine.high %v514_v34, %v514_v34  ;;  %v1217_v37 = vcombine.low %v514_v34, %v514_v34  ;;  %v575_v40 = vld [vmem:[#allocation2 + $0x4] sm:$0xf] }
 0x2d9   :  { %v625_v41 = vld [vmem:[#allocation2 + $0x4] sm:$0xff]  ;;  %v580_v42 = vsel %vm79_vm0, %v575_v40, 0 }
 0x2da   :  { %522 = vrot.lane.b32.xlu1 %v1218_v36, %s1812_s13  ;;  %520 = vrot.lane.b32.xlu0 %v1217_v37, %s1812_s13  ;;  %v1224_v43 = vcombine.high %v625_v41, %v625_v41  ;;  %v1223_v44 = vcombine.low %v625_v41, %v625_v41 }
 0x2db   :  { %1456 = vmatmul.mubr.msk.bf16.vlgmr.msra.gmra.mrb[12].mxu0 %vm75_vm2, %v1215_v39 }
 0x2dc   :  { %1466 = vmatpush3.bf16.msra.mxu0 %v580_v42  ;;  %1467 = vmatprep.mubr.msk.bf16.mxu0 %vm1807_vm1, %v1806_v1 }
 0x2dd   :  { %1683 = vmatprep.subr.bf16.mxu0 %v1810_v12 }
 0x2de   :  { %633 = vrot.lane.b32.xlu1 %v1224_v43, %s1809_s28  ;;  %631 = vrot.lane.b32.xlu0 %v1223_v44, %s1809_s28 }
 0x2e2   :  { %688 = vperm.xlu0 %1787, %v683_v45  }
 0x2e3   :  { %1468 = vmatmul.mubr.msk.bf16.vlgmr.msra.gmra.mrb[16].mxu0 %vm75_vm2, %v1220_v46 }
 0x2e4   :  { %1685 = vmatpush3.bf16.msra.mxu0 %v1899_v11  ;;  %1509 = vmatprep.mubr.msk.f32.mxu0 %vm1807_vm1, %v1806_v1 }
 0x2e5   :  { %1686 = vmatprep.subr.bf16.mxu0 %v1810_v12 }
 0x2e8   :  { %1688 = vmatpush3.bf16.msra.mxu0 %v1914_v15 }
 0x2e9   :  { %1689 = vmatprep.subr.bf16.mxu0 %v1810_v12 }
 0x2ec   :  { %1691 = vmatpush3.bf16.msra.mxu0 %v1924_v18 }
 0x2ed   :  { %1692 = vmatprep.subr.bf16.mxu0 %v1810_v12 }
 0x2f0   :  { %1694 = vmatpush3.bf16.msra.mxu0 %v1934_v21 }
 0x2f1   :  { %1695 = vmatprep.subr.bf16.mxu0 %v1810_v12 }
 0x2f4   :  { %1697 = vmatpush3.bf16.msra.mxu0 %v1944_v24 }
 0x2f5   :  { %1698 = vmatprep.subr.bf16.mxu0 %v1810_v12 }
 0x2f8   :  { %1700 = vmatpush3.bf16.msra.mxu0 %v1954_v27 }
 0x2f9   :  { %1701 = vmatprep.subr.bf16.mxu0 %v1810_v12 }
 0x2fc   :  { %1703 = vmatpush3.bf16.msra.mxu0 %v1985_v35 }
 0x2fd   :  { %1704 = vmatprep.subr.bf16.mxu0 %v1810_v12 }
 0x300   :  { %1706 = vmatpush3.bf16.msra.mxu0 %v1997_v38 }
 0x301   :  { %1547 = vmatprep.subr.bf16.mxu0 %v1806_v1 }
 0x34c   :  { %v523_v51 = vpop.permute.xlu1 %522  ;;  %v521_v52 = vpop.permute.xlu0 %520 }
 0x34d   :  { %v525_v53 = vsel %vm524_vm6, %v521_v52, %v523_v51 }
 0x34e   :  { %v530_v54 = vsel %vm79_vm0, %v525_v53, 0 }
 0x34f   :  { %1460 = vmatpush3.bf16.msra.mxu1 %v530_v54 }
 0x350   :  { %v634_v56 = vpop.permute.xlu1 %633  ;;  %v632_v57 = vpop.permute.xlu0 %631  ;;  %1471 = vmatprep.subr.bf16.mxu1 %v1806_v1 }
 0x351   :  { %v635_v58 = vsel %vm73_vm4, %v632_v57, %v634_v56 }
 0x352   :  { %v640_v59 = vsel %vm79_vm0, %v635_v58, 0  ;;  %1462 = vmatmul.mubr.msk.bf16.vlgmr.msra.gmra.mrb[12].mxu1 %vm75_vm2, %v513_v55 }
 0x353   :  { %1472 = vmatpush3.bf16.msra.mxu1 %v640_v59  ;;  %1473 = vmatprep.mubr.msk.bf16.mxu1 %vm1807_vm1, %v1806_v1 }
 0x354   :  { %1707 = vmatprep.subr.bf16.mxu1 %v1810_v12 }
 0x35a   :  { %1474 = vmatmul.mubr.msk.bf16.vlgmr.msra.gmra.mrb[16].mxu1 %vm75_vm2, %v1222_v60 }
 0x35b   :  { %1709 = vmatpush3.bf16.msra.mxu1 %v1899_v11  ;;  %1544 = vmatprep.mubr.msk.f32.mxu1 %vm1807_vm1, %v1806_v1 }
 0x35c   :  { %1710 = vmatprep.subr.bf16.mxu1 %v1810_v12 }
 0x35f   :  { %1712 = vmatpush3.bf16.msra.mxu1 %v1914_v15 }
 0x360   :  { %1713 = vmatprep.subr.bf16.mxu1 %v1810_v12 }
 0x361   :  { %v689_v29 = vpop.permute.xlu0 %688 }
 0x363   :  { %1715 = vmatpush3.bf16.msra.mxu1 %v1924_v18 }
 0x364   :  { %1716 = vmatprep.subr.bf16.mxu1 %v1810_v12 }
 0x367   :  { %1718 = vmatpush3.bf16.msra.mxu1 %v1934_v21 }
 0x368   :  { %1719 = vmatprep.subr.bf16.mxu1 %v1810_v12 }
 0x36b   :  { %1721 = vmatpush3.bf16.msra.mxu1 %v1944_v24 }
 0x36c   :  { %1722 = vmatprep.subr.bf16.mxu1 %v1810_v12 }
 0x36f   :  { %1724 = vmatpush3.bf16.msra.mxu1 %v1954_v27 }
 0x370   :  { %1725 = vmatprep.subr.bf16.mxu1 %v1810_v12 }
 0x373   :  { %1727 = vmatpush3.bf16.msra.mxu1 %v1985_v35 }
 0x374   :  { %1728 = vmatprep.subr.bf16.mxu1 %v1810_v12 }
 0x377   :  { %1730 = vmatpush3.bf16.msra.mxu1 %v1997_v38 }
 0x378   :  { %1553 = vmatprep.subr.bf16.mxu1 %v1806_v1 }
 0x3a6   :  { %v406_v61 = vpop.f32.mrb[8].mxu0 }
 0x3a7   :  { %v1445_v62 = vpop.f32.mrb[9].mxu0  ;;  %v453_v63 = vadd.f32 %v452_v47, %v406_v61  ;;  %v684_v47 = vld [vmem:[%s2207_s9 + $0x8] sm:$0xff] }
 0x3a8   :  { %v409_v0 = vpop.f32.mrb[10].mxu0 }
 0x3a9   :  { %v1446_v2 = vpop.f32.mrb[11].mxu0 }
 0x3aa   :  { %v1226_v2 = vld [vmem:[%s2209_s7 + $0x4] sm:$0xf] }
 0x3ae   :  { %v506_v3 = vpop.f32.mrb[12].mxu0 }
 0x3af   :  { %v512_v4 = vadd.f32 %v506_v3, %v453_v63  ;;  %v1457_v5 = vpop.f32.mrb[13].mxu0 }
 0x3b0   :  { %v509_v6 = vpop.f32.mrb[14].mxu0 }
 0x3b1   :  { %v1458_v7 = vpop.f32.mrb[15].mxu0 }
 0x3b6   :  { %v616_v8 = vpop.f32.mrb[16].mxu0 }
 0x3b7   :  { %v1469_v9 = vpop.f32.mrb[17].mxu0 }
 0x3b8   :  { %v619_v10 = vpop.f32.mrb[18].mxu0  ;;  %v859_v9 = vld [vmem:[%s2209_s7] sm:$0xf] }
 0x3b9   :  { %v1470_v13 = vpop.f32.mrb[19].mxu0 }
 0x425   :  { %v566_v14 = vpop.f32.mrb[12].mxu1 }
 0x426   :  { %v572_v16 = vadd.f32 %v566_v14, %v512_v4  ;;  %v1463_v19 = vpop.f32.mrb[13].mxu1  ;;  %v1026_v4 = vld [vmem:[%s2210_s10] sm:$0xff] }
 0x427   :  { %v569_v20 = vpop.f32.mrb[14].mxu1  ;;  %v1231_v19 = vld [vmem:[%s2209_s7 + $0x8] sm:$0xf] }
 0x428   :  { %v622_v22 = vadd.f32 %v616_v8, %v572_v16  ;;  %v1464_v23 = vpop.f32.mrb[15].mxu1 }
 0x42d   :  { %v676_v25 = vpop.f32.mrb[16].mxu1 }
 0x42e   :  { %v682_v26 = vadd.f32 %v676_v25, %v622_v22  ;;  %v1475_v28 = vpop.f32.mrb[17].mxu1 }
 0x42f   :  { %v679_v30 = vpop.f32.mrb[18].mxu1 }
 0x430   :  { %v691_v31 = vadd.f32 %v689_v29, %v682_v26  ;;  %v1476_v32 = vpop.f32.mrb[19].mxu1 }
 0x432   :  { %v692_v33 = vmax.f32 %v691_v31, 0.0 }
 0x434   :  { %1510 = vmatmul.mubr.f32.vlgmr.msra.gmra.mrb[6].mxu0 %v692_v33  ;;  %v763_v34 = vmul.f32 %v692_v33, %v692_v33 }
 0x435   :  { %1549 = vmatprep.mubr.msk.bf16.mxu0 %vm1807_vm1, %v1806_v1 }
 0x436   :  { %1545 = vmatmul.mubr.f32.vlgmr.msra.gmra.mrb[6].mxu1 %v763_v34 }
 0x437   :  { %1555 = vmatprep.mubr.msk.bf16.mxu1 %vm1807_vm1, %v1806_v1 }
 0x507   :  { %v759_v36 = vpop.f32.mrb[6].mxu0 }
 0x508   :  { %v834_v37 = vmul.f32 0.015625, %v759_v36  ;;  %v1511_v39 = vpop.f32.mrb[7].mxu0 }
 0x509   :  { %v830_v40 = vpop.f32.mrb[6].mxu1 }
 0x50a   :  { %v836_v41 = vmul.f32 %v834_v37, %v834_v37  ;;  %v835_v42 = vmul.f32 0.015625, %v830_v40  ;;  %v1546_v43 = vpop.f32.mrb[7].mxu1 }
 0x50b   :  { %v1027_v43 = vld [vmem:[%s2210_s10 + $0x8] sm:$0xff] }
 0x50c   :  { %v837_v44 = vsub.f32 %v835_v42, %v836_v41 }
 0x50e   :  { %v838_v45 = vmax.f32 %v837_v44, 0.0 }
 0x510   :  { %v839_v46 = vadd.f32 1e-05, %v838_v45 }
 0x512   :  { %1802 = vrsqrt.f32 %v839_v46  ;;  %v1028_v46 = vld [vmem:[%s2210_s10 + $0x10] sm:$0xff] }
 0x51c   :  { %v1803_v48 = vpop.eup %1802 }
 0x51d   :  { %v841_v49 = vmul.f32 %v1803_v48, %v684_v47 }
 0x51f   :  { %846 = vperm.xlu1 %1786, %v841_v49   ;;  %v842_v51 = vmul.f32 %v841_v49, %v834_v37 }
 0x521   :  { %v843_v52 = vsub.f32 %v685_v50, %v842_v51 }
 0x523   :  { %852 = vperm.xlu0 %1787, %v843_v52  }
 0x59e   :  { %v847_v53 = vpop.permute.xlu1 %846 }
 0x59f   :  { %v849_v54 = vmul.f32 %v847_v53, %v692_v33 }
 0x5a2   :  { %v853_v55 = vpop.permute.xlu0 %852 }
 0x5a3   :  { %v855_v56 = vadd.f32 %v853_v55, %v849_v54 }
 0x5a5   :  { %v856_v57 = vmul.f32 %v2032_v17, %v855_v56 }
 0x5a7   :  { %v857_v58 = vpack.c.bf16 %v856_v57, %v856_v57 }
 0x5a9   :  { %858 = vst [vmem:[#allocation2 + $0x4] sm:$0xf] %v857_v58 }
 0x5b0   :  { %v863_v59 = vld [vmem:[#allocation2 + $0x4] sm:$0xf] }
 0x5b1   :  { %v860_v60 = vld [vmem:[#allocation2] sm:$0xff]  ;;  %v868_v61 = vsel %vm79_vm0, %v863_v59, 0 }
 0x5b2   :  { %v1229_v62 = vcombine.high %v860_v60, %v860_v60  ;;  %v1228_v63 = vcombine.low %v860_v60, %v860_v60  ;;  %1548 = vmatpush3.bf16.msra.mxu0 %v868_v61  ;;  %v968_v0 = vld [vmem:[#allocation2 + $0x4] sm:$0xff] }
 0x5b3   :  { %1559 = vmatprep.subr.bf16.mxu0 %v1806_v1  ;;  %v1233_v17 = vcombine.high %v968_v0, %v968_v0  ;;  %v1232_v3 = vcombine.low %v968_v0, %v968_v0 }
 0x5b4   :  { %917 = vrot.lane.b32.xlu0 %v1229_v62, %s1812_s13  ;;  %915 = vrot.lane.b32.xlu1 %v1228_v63, %s1812_s13 }
 0x5b5   :  { %1550 = vmatmul.mubr.msk.bf16.vlgmr.msra.gmra.mrb[20].mxu0 %vm75_vm2, %v1226_v2 }
 0x5b6   :  { %1561 = vmatprep.mubr.msk.bf16.mxu0 %vm1807_vm1, %v1806_v1 }
 0x5b8   :  { %976 = vrot.lane.b32.xlu0 %v1233_v17, %s1809_s28  ;;  %974 = vrot.lane.b32.xlu1 %v1232_v3, %s1809_s28 }
 0x5bc   :  { %1031 = vperm.xlu1 %1786, %v1026_v4  }
 0x626   :  { %v918_v5 = vpop.permute.xlu0 %917  ;;  %v916_v6 = vpop.permute.xlu1 %915 }
 0x627   :  { %v919_v7 = vsel %vm524_vm6, %v916_v6, %v918_v5 }
 0x628   :  { %v924_v8 = vsel %vm79_vm0, %v919_v7, 0 }
 0x629   :  { %1554 = vmatpush3.bf16.msra.mxu1 %v924_v8 }
 0x62a   :  { %v977_v10 = vpop.permute.xlu0 %976  ;;  %v975_v13 = vpop.permute.xlu1 %974  ;;  %1731 = vmatprep.subr.bf16.mxu1 %v1810_v12 }
 0x62b   :  { %v978_v14 = vsel %vm73_vm4, %v975_v13, %v977_v10 }
 0x62c   :  { %v983_v16 = vsel %vm79_vm0, %v978_v14, 0  ;;  %1556 = vmatmul.mubr.msk.bf16.vlgmr.msra.gmra.mrb[20].mxu1 %vm75_vm2, %v859_v9 }
 0x62d   :  { %1560 = vmatpush3.bf16.msra.mxu0 %v983_v16  ;;  %1733 = vmatpush3.bf16.msra.mxu1 %v1899_v11 }
 0x62e   :  { %1755 = vmatprep.subr.bf16.mxu0 %v1810_v12  ;;  %1734 = vmatprep.subr.bf16.mxu1 %v1810_v12 }
 0x62f   :  { %1597 = vmatprep.mubr.msk.f32.mxu1 %vm1807_vm1, %v1806_v1 }
 0x630   :  { %1562 = vmatmul.mubr.msk.bf16.vlgmr.msra.gmra.mrb[24].mxu0 %vm75_vm2, %v1231_v19 }
 0x631   :  { %1757 = vmatpush3.bf16.msra.mxu0 %v1899_v11  ;;  %1736 = vmatpush3.bf16.msra.mxu1 %v1914_v15 }
 0x632   :  { %1758 = vmatprep.subr.bf16.mxu0 %v1810_v12  ;;  %1737 = vmatprep.subr.bf16.mxu1 %v1810_v12 }
 0x633   :  { %1632 = vmatprep.mubr.msk.f32.mxu0 %vm1807_vm1, %v1806_v1 }
 0x635   :  { %1760 = vmatpush3.bf16.msra.mxu0 %v1914_v15  ;;  %1739 = vmatpush3.bf16.msra.mxu1 %v1924_v18 }
 0x636   :  { %1761 = vmatprep.subr.bf16.mxu0 %v1810_v12  ;;  %1740 = vmatprep.subr.bf16.mxu1 %v1810_v12 }
 0x639   :  { %1763 = vmatpush3.bf16.msra.mxu0 %v1924_v18  ;;  %1742 = vmatpush3.bf16.msra.mxu1 %v1934_v21 }
 0x63a   :  { %1764 = vmatprep.subr.bf16.mxu0 %v1810_v12  ;;  %1743 = vmatprep.subr.bf16.mxu1 %v1810_v12 }
 0x63b   :  { %v1032_v28 = vpop.permute.xlu1 %1031 }
 0x63d   :  { %1766 = vmatpush3.bf16.msra.mxu0 %v1934_v21  ;;  %1745 = vmatpush3.bf16.msra.mxu1 %v1944_v24 }
 0x63e   :  { %1767 = vmatprep.subr.bf16.mxu0 %v1810_v12  ;;  %1746 = vmatprep.subr.bf16.mxu1 %v1810_v12 }
 0x641   :  { %1769 = vmatpush3.bf16.msra.mxu0 %v1944_v24  ;;  %1748 = vmatpush3.bf16.msra.mxu1 %v1954_v27 }
 0x642   :  { %1770 = vmatprep.subr.bf16.mxu0 %v1810_v12  ;;  %1749 = vmatprep.subr.bf16.mxu1 %v1810_v12 }
 0x645   :  { %1772 = vmatpush3.bf16.msra.mxu0 %v1954_v27  ;;  %1751 = vmatpush3.bf16.msra.mxu1 %v1985_v35 }
 0x646   :  { %1773 = vmatprep.subr.bf16.mxu0 %v1810_v12  ;;  %1752 = vmatprep.subr.bf16.mxu1 %v1810_v12 }
 0x649   :  { %1775 = vmatpush3.bf16.msra.mxu0 %v1985_v35  ;;  %1754 = vmatpush3.bf16.msra.mxu1 %v1997_v38 }
 0x64a   :  { %1776 = vmatprep.subr.bf16.mxu0 %v1810_v12 }
 0x64d   :  { %1778 = vmatpush3.bf16.msra.mxu0 %v1997_v38 }
 0x688   :  { %v904_v1 = vpop.f32.mrb[20].mxu0 }
 0x689   :  { %v1551_v11 = vpop.f32.mrb[21].mxu0 }
 0x68a   :  { %v907_v15 = vpop.f32.mrb[22].mxu0 }
 0x68b   :  { %v1552_v18 = vpop.f32.mrb[23].mxu0 }
 0x6ff   :  { %v960_v21 = vpop.f32.mrb[20].mxu1 }
 0x700   :  { %v961_v24 = vadd.f32 %v960_v21, %v904_v1  ;;  %v1557_v27 = vpop.f32.mrb[21].mxu1 }
 0x701   :  { %v963_v20 = vpop.f32.mrb[22].mxu1 }
 0x702   :  { %v1558_v22 = vpop.f32.mrb[23].mxu1 }
 0x703   :  { %v1019_v23 = vpop.f32.mrb[24].mxu0 }
 0x704   :  { %v1025_v25 = vadd.f32 %v1019_v23, %v961_v24  ;;  %v1563_v26 = vpop.f32.mrb[25].mxu0 }
 0x705   :  { %v1022_v35 = vpop.f32.mrb[26].mxu0 }
 0x706   :  { %v1034_v29 = vadd.f32 %v1032_v28, %v1025_v25  ;;  %v1564_v30 = vpop.f32.mrb[27].mxu0 }
 0x708   :  { %v1035_v31 = vmax.f32 %v1034_v29, 0.0 }
 0x70a   :  { %1598 = vmatmul.mubr.f32.vlgmr.msra.gmra.mrb[24].mxu1 %v1035_v31  ;;  %v1106_v12 = vmul.f32 %v1035_v31, %v1035_v31 }
 0x70c   :  { %1633 = vmatmul.mubr.f32.vlgmr.msra.gmra.mrb[28].mxu0 %v1106_v12 }
 0x7dd   :  { %v1102_v38 = vpop.f32.mrb[24].mxu1 }
 0x7de   :  { %v1177_v32 = vmul.f32 0.015625, %v1102_v38  ;;  %v1599_v33 = vpop.f32.mrb[25].mxu1 }
 0x7df   :  { %v1173_v34 = vpop.f32.mrb[28].mxu0 }
 0x7e0   :  { %v1179_v36 = vmul.f32 %v1177_v32, %v1177_v32  ;;  %v1178_v37 = vmul.f32 0.015625, %v1173_v34  ;;  %v1634_v39 = vpop.f32.mrb[29].mxu0 }
 0x7e2   :  { %v1180_v40 = vsub.f32 %v1178_v37, %v1179_v36 }
 0x7e4   :  { %v1181_v41 = vmax.f32 %v1180_v40, 0.0 }
 0x7e6   :  { %v1182_v42 = vadd.f32 1e-05, %v1181_v41 }
 0x7e8   :  { %1804 = vrsqrt.f32 %v1182_v42 }
 0x7f2   :  { %v1805_v44 = vpop.eup %1804 }
 0x7f3   :  { %v1184_v45 = vmul.f32 %v1805_v44, %v1027_v43 }
 0x7f5   :  { %1189 = vperm.xlu0 %1787, %v1184_v45   ;;  %v1185_v47 = vmul.f32 %v1184_v45, %v1177_v32 }
 0x7f7   :  { %v1186_v48 = vsub.f32 %v1028_v46, %v1185_v47 }
 0x7f9   :  { %1195 = vperm.xlu1 %1786, %v1186_v48  }
 0x874   :  { %v1190_v49 = vpop.permute.xlu0 %1189 }
 0x875   :  { %v1192_v50 = vmul.f32 %v1190_v49, %v1035_v31 }
 0x878   :  { %v1196_v51 = vpop.permute.xlu1 %1195 }
 0x879   :  { %v1198_v52 = vadd.f32 %v1196_v51, %v1192_v50 }
 0x87b   :  { %1199 = vst [vmem:[%s2211_s11] sm:$0xff] %v1198_v52 }

</bundles_post_ra>
